<compile_context>
chip_gen: v7x
topology: tpu7x:2x2x1
jax: 0.10.0
libtpu: 0.0.40
codegen_flags: <defaults>
</compile_context>

<pallas_src>
import functools

import jax
import jax.numpy as jnp
from jax.experimental import pallas as pl
from jax.experimental.pallas import tpu as pltpu

_EPS = 1e-8  # matches torch.nn.functional.cosine_similarity default eps


def _matching_network_kernel(support_ref, one_hot_ref, query_ref, out_ref, *, precision):
    # support_ref: [N, D]      f32, rows pre-normalized (unit L2, eps-clamped) -- resident
    # one_hot_ref: [N, C_pad]  f32                                             -- resident
    # query_ref:   [TB, D]     f32 (one tile of the query batch)
    # out_ref:     [TB, C_pad] f32
    q = query_ref[...]                                             # [TB, D]

    # Query normalization on the small [TB, D] tile (support is already unit-norm,
    # so the MXU matmul below directly yields cosine similarities).
    inv_q = jax.lax.rsqrt(
        jnp.maximum(jnp.sum(q * q, axis=-1, keepdims=True), _EPS * _EPS))  # 1/max(||q||,eps)
    qn = q * inv_q                                                 # [TB, D]

    # Cosine similarity on the MXU, contracting D with support kept [N, D]
    # (transposed-RHS matmul, no wrapper transpose): [TB, D] x [N, D]^T -> [TB, N].
    sim = jax.lax.dot_general(
        qn, support_ref[...], (((1,), (1,)), ((), ())),
        precision=precision, preferred_element_type=jnp.float32)  # [TB, N] lane-dense

    # Softmax over the support axis (lane reductions); normalization deferred past
    # the second matmul so the full-width divide is on [TB, C_pad], not [TB, N].
    m = jnp.max(sim, axis=-1, keepdims=True)                       # [TB, 1]
    e = jnp.exp(sim - m)                                           # [TB, N]
    sum_e = jnp.sum(e, axis=-1, keepdims=True)                     # [TB, 1]

    unnorm = jnp.dot(e, one_hot_ref[...],
                     precision=precision,
                     preferred_element_type=jnp.float32)           # [TB, C_pad]
    out_ref[...] = unnorm / sum_e                                  # exact divide (1e-5 contract)


@functools.partial(jax.jit, static_argnames=("num_classes", "precision"))
def matching_network_forward(support_embeddings, support_labels, query_embedding,
                             *, num_classes, precision=None):
    """Pallas implementation of MatchingNetwork.forward.

    support_embeddings: [N, D] float32
    support_labels:     [N]    int32
    query_embedding:    [D] (single query) or [B, D] (batched queries) float32
    precision:          optional lax.Precision for the MXU matmuls (e.g.
                        jax.lax.Precision.HIGHEST for strict f32 at large D/N).
    returns:            [C] or [B, C] float32 predictions
    """
    single_query = query_embedding.ndim == 1
    q = jnp.atleast_2d(query_embedding).astype(jnp.float32)           # [B, D]
    s = support_embeddings.astype(jnp.float32)                        # [N, D]
    labels = support_labels.astype(jnp.int32)                         # [N]

    n, d = s.shape
    b = q.shape[0]

    # One-time (amortized over all query tiles) support pre-normalization; keeps
    # the [N, D] layout so no HBM relayout/transpose pass is needed.
    s_norm = jnp.sqrt(jnp.sum(s * s, axis=-1, keepdims=True))          # [N, 1]
    s_n = s / jnp.maximum(s_norm, _EPS)                                # [N, D]

    # Lane-dense padded class dimension (extra class ids never match any label).
    c_pad = pl.cdiv(num_classes, 128) * 128
    one_hot = (labels[:, None]
               == jnp.arange(c_pad, dtype=jnp.int32)[None, :]).astype(jnp.float32)  # [N, c_pad]

    # Query-batch tiling: up to 128 rows per tile (fills a 128-wide MXU pass),
    # clamped to round_up(B, 8) so tiny batches don't pad to 128 wasted rows, and
    # split into >= 2 grid steps when possible so ("parallel",) can shard the
    # query axis across v7x's two TensorCores.
    b_pad8 = pl.cdiv(b, 8) * 8
    if b_pad8 <= 8:
        tb = b_pad8
    else:
        tb = min(128, pl.cdiv(b_pad8, 2))
        tb = pl.cdiv(tb, 8) * 8
    b_pad = pl.cdiv(b_pad8, tb) * tb
    q_pad = jnp.pad(q, ((0, b_pad - b), (0, 0)))                       # zero rows are harmless

    # VMEM budget: every BlockSpec block is double-buffered by the default
    # pipeliner (counted x2, residents included), plus ~3x [TB, N] temporaries
    # (sim / e / scratch) and headroom.  Capped at 75% of this generation's
    # physical VMEM (v7x: 48 of 64 MiB; v5e/v6e: 96 of 128 MiB).
    try:
        vmem_cap = int(pltpu.get_tpu_info().vmem_capacity_bytes)
    except Exception:                                                  # conservative fallback
        vmem_cap = 64 << 20
    vmem_bytes = 4 * (2 * (n * d + n * c_pad)          # resident support + one-hot (x2 buffers)
                      + 2 * (tb * d + tb * c_pad)      # query / output tiles (x2 buffers)
                      + 3 * tb * n)                    # [TB, N] intermediates
    vmem_bytes += 2 << 20
    vmem_limit = int(min(max(vmem_bytes, 32 << 20), (vmem_cap * 3) // 4))

    kernel = functools.partial(_matching_network_kernel, precision=precision)
    out = pl.pallas_call(
        kernel,
        out_shape=jax.ShapeDtypeStruct((b_pad, c_pad), jnp.float32),
        grid=(b_pad // tb,),
        in_specs=[
            pl.BlockSpec((n, d), lambda i: (0, 0)),         # normalized support, resident
            pl.BlockSpec((n, c_pad), lambda i: (0, 0)),     # one-hot, resident
            pl.BlockSpec((tb, d), lambda i: (i, 0)),        # query tile
        ],
        out_specs=pl.BlockSpec((tb, c_pad), lambda i: (i, 0)),
        compiler_params=pltpu.CompilerParams(
            dimension_semantics=("parallel",),              # shards query tiles across TCs on v7x
            vmem_limit_bytes=vmem_limit,
        ),
    )(s_n, one_hot, q_pad)

    out = out[:b, :num_classes]                              # strip B / class padding
    return out[0] if single_query else out


def _reference_forward(support_embeddings, support_labels, query_embedding, num_classes):
    # Pure-JAX reference mirroring the same (mathematically equivalent) computation
    # order as the kernel: normalize-then-matmul, unnormalized-softmax-then-divide.
    q = jnp.atleast_2d(query_embedding).astype(jnp.float32)            # [B, D]
    s = support_embeddings.astype(jnp.float32)                         # [N, D]
    q_n = q / jnp.maximum(jnp.linalg.norm(q, axis=-1, keepdims=True), _EPS)
    s_n = s / jnp.maximum(jnp.linalg.norm(s, axis=-1, keepdims=True), _EPS)
    sim = q_n @ s_n.T                                                  # [B, N] cosine sims
    m = jnp.max(sim, axis=-1, keepdims=True)
    e = jnp.exp(sim - m)
    one_hot = jax.nn.one_hot(support_labels, num_classes, dtype=jnp.float32)
    out = (e @ one_hot) / jnp.sum(e, axis=-1, keepdims=True)
    return out[0] if query_embedding.ndim == 1 else out


if __name__ == "__main__":
    # Small synthetic shapes consistent with the forward pass:
    # N support examples, embedding dim D, C classes, B batched queries.
    N, D, C, B = 8, 32, 4, 4

    key = jax.random.PRNGKey(0)
    k_sup, k_query, k_lab = jax.random.split(key, 3)

    support_embeddings = jax.random.normal(k_sup, (N, D), dtype=jnp.float32)
    queries = jax.random.normal(k_query, (B, D), dtype=jnp.float32)
    support_labels = jax.random.randint(k_lab, (N,), 0, C, dtype=jnp.int32)

    # Batched-query path.
    preds_b = matching_network_forward(
        support_embeddings, support_labels, queries, num_classes=C)
    preds_b = jax.block_until_ready(preds_b)
    ref_b = _reference_forward(support_embeddings, support_labels, queries, C)
    assert preds_b.shape == (B, C)
    assert jnp.allclose(preds_b, ref_b, atol=1e-5, rtol=1e-5), (preds_b, ref_b)
    assert jnp.allclose(jnp.sum(preds_b, axis=-1), 1.0, atol=1e-5)

    # Single-query path (matches the original module call signature).
    preds_1 = matching_network_forward(
        support_embeddings, support_labels, queries[0], num_classes=C)
    preds_1 = jax.block_until_ready(preds_1)
    ref_1 = _reference_forward(support_embeddings, support_labels, queries[0], C)
    assert preds_1.shape == (C,)
    assert jnp.allclose(preds_1, ref_1, atol=1e-5, rtol=1e-5), (preds_1, ref_1)
    assert jnp.allclose(jnp.sum(preds_1), 1.0, atol=1e-5)

    print("KERNEL_OK")
</pallas_src>

<mosaic_0001>
module attributes {stable_mosaic.version = 11 : i64} {
  func.func @_matching_network_kernel(%arg0: i32, %arg1: memref<8x32xf32, #tpu.memory_space<vmem>>, %arg2: memref<8x128xf32, #tpu.memory_space<vmem>>, %arg3: memref<8x32xf32, #tpu.memory_space<vmem>>, %arg4: memref<8x128xf32, #tpu.memory_space<vmem>>) attributes {dimension_semantics = [#tpu.dimension_semantics<parallel>], iteration_bounds = array<i64: 1>, scalar_prefetch = 0 : i64, scratch_operands = 0 : i64, tpu.core_type = #tpu.core_type<tc>, window_params = [{pipeline_mode = #tpu.pipeline_mode<synchronous>, transform_indices = @transform_0, window_bounds = array<i64: 8, 32>}, {pipeline_mode = #tpu.pipeline_mode<synchronous>, transform_indices = @transform_1, window_bounds = array<i64: 8, 128>}, {transform_indices = @transform_2, window_bounds = array<i64: 8, 32>}, {transform_indices = @transform_3, window_bounds = array<i64: 8, 128>}]} {
    %c0 = arith.constant 0 : index
    %c0_0 = arith.constant 0 : index
    %0 = vector.load %arg3[%c0, %c0_0] : memref<8x32xf32, #tpu.memory_space<vmem>>, vector<8x32xf32>
    %1 = arith.mulf %0, %0 : vector<8x32xf32>
    %cst = arith.constant dense<0.000000e+00> : vector<8xf32>
    %2 = vector.multi_reduction <add>, %1, %cst [1] : vector<8x32xf32> to vector<8xf32>
    %3 = vector.shape_cast %2 : vector<8xf32> to vector<8x1xf32>
    %cst_1 = arith.constant 1.000000e-16 : f32
    %4 = vector.broadcast %cst_1 : f32 to vector<8x1xf32>
    %5 = arith.maximumf %3, %4 : vector<8x1xf32>
    %6 = math.rsqrt %5 : vector<8x1xf32>
    %7 = vector.broadcast %6 : vector<8x1xf32> to vector<8x32xf32>
    %8 = arith.mulf %0, %7 : vector<8x32xf32>
    %c0_2 = arith.constant 0 : index
    %c0_3 = arith.constant 0 : index
    %9 = vector.load %arg1[%c0_2, %c0_3] : memref<8x32xf32, #tpu.memory_space<vmem>>, vector<8x32xf32>
    %cst_4 = arith.constant dense<0.000000e+00> : vector<8x8xf32>
    %10 = tpu.matmul %8, %9, %cst_4 {dimension_numbers = #tpu.dot_dimension_numbers<[1], [1], [0], [0], [0, 0, 1, 0], [], []>} : vector<8x32xf32>, vector<8x32xf32>, vector<8x8xf32> -> vector<8x8xf32>
    %cst_5 = arith.constant dense<0xFF800000> : vector<8xf32>
    %11 = vector.multi_reduction <maximumf>, %10, %cst_5 [1] : vector<8x8xf32> to vector<8xf32>
    %12 = vector.shape_cast %11 : vector<8xf32> to vector<8x1xf32>
    %13 = vector.broadcast %12 : vector<8x1xf32> to vector<8x8xf32>
    %14 = arith.subf %10, %13 : vector<8x8xf32>
    %15 = math.exp %14 : vector<8x8xf32>
    %cst_6 = arith.constant dense<0.000000e+00> : vector<8xf32>
    %16 = vector.multi_reduction <add>, %15, %cst_6 [1] : vector<8x8xf32> to vector<8xf32>
    %17 = vector.shape_cast %16 : vector<8xf32> to vector<8x1xf32>
    %c0_7 = arith.constant 0 : index
    %c0_8 = arith.constant 0 : index
    %18 = vector.load %arg2[%c0_7, %c0_8] : memref<8x128xf32, #tpu.memory_space<vmem>>, vector<8x128xf32>
    %cst_9 = arith.constant dense<0.000000e+00> : vector<8x128xf32>
    %19 = tpu.matmul %15, %18, %cst_9 {dimension_numbers = #tpu.dot_dimension_numbers<[1], [0], [0], [1], [0, 0, 1, 1], [], []>} : vector<8x8xf32>, vector<8x128xf32>, vector<8x128xf32> -> vector<8x128xf32>
    %20 = vector.broadcast %17 : vector<8x1xf32> to vector<8x128xf32>
    %21 = arith.divf %19, %20 : vector<8x128xf32>
    %c0_10 = arith.constant 0 : index
    %c0_11 = arith.constant 0 : index
    %22 = vector.load %arg4[%c0_10, %c0_11] : memref<8x128xf32, #tpu.memory_space<vmem>>, vector<8x128xf32>
    tpu.vector_store %arg4[%c0_10, %c0_11], %21 {strides = array<i32>} : memref<8x128xf32, #tpu.memory_space<vmem>>, vector<8x128xf32>,
    return
  }
  func.func @transform_0(%arg0: i32) -> (i32, i32) {
    %c0_i32 = arith.constant 0 : i32
    %c0_i32_0 = arith.constant 0 : i32
    %c0_i32_1 = arith.constant 0 : i32
    return %c0_i32, %c0_i32_0 : i32, i32
  }
  func.func @transform_1(%arg0: i32) -> (i32, i32) {
    %c0_i32 = arith.constant 0 : i32
    %c0_i32_0 = arith.constant 0 : i32
    %c0_i32_1 = arith.constant 0 : i32
    return %c0_i32, %c0_i32_0 : i32, i32
  }
  func.func @transform_2(%arg0: i32) -> (i32, i32) {
    %c0_i32 = arith.constant 0 : i32
    %c0_i32_0 = arith.constant 0 : i32
    return %arg0, %c0_i32 : i32, i32
  }
  func.func @transform_3(%arg0: i32) -> (i32, i32) {
    %c0_i32 = arith.constant 0 : i32
    %c0_i32_0 = arith.constant 0 : i32
    return %arg0, %c0_i32 : i32, i32
  }
}

</mosaic_0001>

<bundles_post_ra>
// kernel: matching_network_forward.1
= control target key start
LH: loop header
LB: loop body
LE: loop exit
PB: predicated region body
PF: predicated region fallthrough
CT: control target
= control target key end

     0   :  { %vm16_vm0 = vcmask 261120   ;;  %v216_v3 = vmov 0.0   ;;  %vm217_vm1 = vmmov 0   ;;  %vm100_vm2 = vcmask 64512   ;;  %s253_s2 = inlined_call_operand.vmem [shape: f32[8,32], index: 2, kind: input, shape index: {}]   ;;  %s254_s0 = inlined_call_operand.vmem [shape: f32[8,32], index: 0, kind: input, shape index: {}]   ;;  %s255_s1 = inlined_call_operand.vmem [shape: f32[8,128], index: 1, kind: input, shape index: {}]   ;;  %s256_s3 = inlined_call_operand.vmem [shape: f32[8,128], index: 3, kind: output, shape index: {}]  }
   0x1   :  { %v14_v0 = vld [vmem:[%s253_s2] sm:$0xff]  ;;  %198 = vmatprep.subr.mxu0 %v216_v3  ;;  %200 = vmatprep.mubr.msk.f32.mxu0 %vm217_vm1, %v216_v3 }
   0x2   :  { %v15_v1 = vmul.f32 %v14_v0, %v14_v0  ;;  %v23_v4 = vld [vmem:[%s254_s0] sm:$0xff]  ;;  %203 = vmatprep.subr.mxu1 %v216_v3  ;;  %205 = vmatprep.mubr.msk.f32.mxu1 %vm217_vm1, %v216_v3 }
   0x3   :  { %199 = vmatpush3.xpose.msk.msra.mxu0 %vm16_vm0, %v23_v4  ;;  %v110_v12 = vld [vmem:[%s255_s1] sm:$0xff] }
   0x4   :  { %v17_v2 = vsel %vm16_vm0, %v15_v1, 0.0  ;;  %204 = vmatpush3.msra.mxu1 %v110_v12 }
   0x5   :  { %18 = vadd.xlane.f32.xlu0 %v17_v2 }
  0x92   :  { %v19_v5 = vpop.xlane.xlu0 %18 }
  0x93   :  { %v20_v6 = vmax.f32 %v19_v5, 1e-16 }
  0x95   :  { %210 = vrsqrt.f32 %v20_v6 }
  0x9f   :  { %v211_v7 = vpop.eup %210 }
  0xa0   :  { %v22_v8 = vmul.f32 %v211_v7, %v14_v0 }
  0xa2   :  { %201 = vmatmul.mubr.msk.f32.vlgmr.msra.gmra.mrb[0].mxu0 %vm16_vm0, %v22_v8 }
 0x175   :  { %v96_v9 = vpop.f32.mrb[0].mxu0 }
 0x176   :  { %v202_v10 = vpop.f32.mrb[1].mxu0  ;;  %v101_v11 = vsel %vm100_vm2, %v96_v9, -inf }
 0x177   :  { %102 = vmax.xlane.f32.xlu0 %v101_v11 }
 0x204   :  { %v103_v13 = vpop.xlane.xlu0 %102 }
 0x205   :  { %v104_v14 = vsub.f32 %v96_v9, %v103_v13 }
 0x207   :  { %v105_v15 = vmul.f32 1.442695, %v104_v14 }
 0x209   :  { %212 = vpow2.f32 %v105_v15 }
 0x213   :  { %v213_v16 = vpop.eup %212 }
 0x214   :  { %206 = vmatmul.mubr.msk.f32.vlgmr.msra.gmra.mrb[0].mxu1 %vm100_vm2, %v213_v16  ;;  %v107_v17 = vsel %vm100_vm2, %v213_v16, 0.0 }
 0x215   :  { %108 = vadd.xlane.f32.xlu1 %v107_v17 }
 0x2a2   :  { %v109_v18 = vpop.xlane.xlu1 %108 }
 0x2a3   :  { %214 = vrcp.f32 %v109_v18 }
 0x2ad   :  { %v215_v19 = vpop.eup %214 }
 0x2e7   :  { %v180_v20 = vpop.f32.mrb[0].mxu1 }
 0x2e8   :  { %v185_v21 = vmul.f32 %v215_v19, %v180_v20  ;;  %v207_v22 = vpop.f32.mrb[1].mxu1 }
 0x2ea   :  { %186 = vst [vmem:[%s256_s3] sm:$0xff] %v185_v21 }

</bundles_post_ra>
